<compile_context>
chip_gen: v7x
topology: tpu7x:2x2x1
jax: 0.10.0
libtpu: 0.0.40
codegen_flags: <defaults>
</compile_context>

<pallas_src>
import functools

import numpy as np
import jax
import jax.numpy as jnp
from jax.experimental import pallas as pl
from jax.experimental.pallas import tpu as pltpu


_TM, _TN, _TK = 256, 256, 2048           # tile targets (double-buffered ~5 MB VMEM)
_SQRT_HALF = np.float32(0.7071067811865476)


# ------------------------------ small helpers -------------------------------


def _round_up(x, m):
    return (x + m - 1) // m * m


def _pick_tile(dim, target, align):
    """Return (tile, padded_dim).

    * dim <= target: one full-dim tile (block == full array dim, always legal,
      zero padding).
    * otherwise: search exact divisors only down to target/2 (never collapses to
      tiny tiles), else use the target tile and pad dim up to a multiple of it.
    """
    if dim <= target:
        return dim, dim
    for t in range(target, target // 2 - 1, -align):
        if dim % t == 0:
            return t, dim
    return target, _round_up(dim, target)


def _pad2(a, rows, cols):
    r, c = a.shape
    if r == rows and c == cols:
        return a
    return jnp.pad(a, ((0, rows - r), (0, cols - c)))


def _gelu(x):
    # exact (erf) GELU, matching torch.nn.GELU()
    return 0.5 * x * (1.0 + jax.lax.erf(x * _SQRT_HALF))


# ----------------------------- Pallas kernels ------------------------------


def _matmul_kernel(x_ref, w_ref, b_ref, *rest, activation, has_residual):
    """Tiled GEMM with f32 accumulator; bias / GELU / residual fused in finalize."""
    if has_residual:
        res_ref, o_ref, acc_ref = rest
    else:
        res_ref = None
        o_ref, acc_ref = rest

    @pl.when(pl.program_id(2) == 0)
    def _init():
        acc_ref[...] = jnp.zeros_like(acc_ref)

    acc_ref[...] += jnp.dot(x_ref[...].astype(jnp.bfloat16),
                            w_ref[...].astype(jnp.bfloat16),
                            preferred_element_type=jnp.float32)

    @pl.when(pl.program_id(2) == pl.num_programs(2) - 1)
    def _finalize():
        acc = acc_ref[...] + b_ref[...].astype(jnp.float32)
        if activation == "gelu":
            acc = _gelu(acc)
        if has_residual:
            acc = acc + res_ref[...].astype(jnp.float32)
        o_ref[...] = acc.astype(o_ref.dtype)


def _ln_matmul_kernel(x_ref, g_ref, bln_ref, w_ref, b_ref, o_ref, xn_ref, *,
                      eps, activation):
    """LayerNorm (f32 stats over full feature dim) fused with the following GEMM.
    LN is computed once per row tile (at j == 0) into a bf16 VMEM scratch and
    reused across all N tiles."""
    @pl.when(pl.program_id(1) == 0)
    def _ln():
        x = x_ref[...].astype(jnp.float32)                   # (tm, K)
        mu = jnp.mean(x, axis=-1, keepdims=True)
        var = jnp.mean(jnp.square(x - mu), axis=-1, keepdims=True)
        xn = (x - mu) * jax.lax.rsqrt(var + eps)
        xn = xn * g_ref[...].astype(jnp.float32) + bln_ref[...].astype(jnp.float32)
        xn_ref[...] = xn.astype(jnp.bfloat16)

    acc = jnp.dot(xn_ref[...], w_ref[...].astype(jnp.bfloat16),
                  preferred_element_type=jnp.float32)
    acc = acc + b_ref[...].astype(jnp.float32)
    if activation == "gelu":
        acc = _gelu(acc)
    o_ref[...] = acc.astype(o_ref.dtype)


def _attn_kernel(q_ref, k_ref, v_ref, o_ref, *, scale, causal):
    """One (batch, head) pair per grid step. q/k/v blocks are lane-dense
    (1,1,S,Dh) bf16 tiles; scores / softmax / mask stay in f32; the output is a
    single lane-dense store."""
    S = q_ref.shape[2]
    q = q_ref[0, 0]                                           # (S, Dh) bf16
    k = k_ref[0, 0]
    v = v_ref[0, 0]
    s = jax.lax.dot_general(q, k, (((1,), (1,)), ((), ())),
                            preferred_element_type=jnp.float32) * jnp.float32(scale)
    if causal:
        qi = jax.lax.broadcasted_iota(jnp.int32, (S, S), 0)
        ki = jax.lax.broadcasted_iota(jnp.int32, (S, S), 1)
        s = jnp.where(ki <= qi, s, jnp.float32(-1e30))
    s = s - jnp.max(s, axis=-1, keepdims=True)
    p = jnp.exp(s)
    p = p * pl.reciprocal(jnp.sum(p, axis=-1, keepdims=True), approx=True)
    o = jnp.dot(p.astype(jnp.bfloat16), v, preferred_element_type=jnp.float32)
    o_ref[0, 0] = o.astype(o_ref.dtype)


def _layernorm_kernel(x_ref, g_ref, b_ref, o_ref, *, eps):
    x = x_ref[...].astype(jnp.float32)
    mu = jnp.mean(x, axis=-1, keepdims=True)
    var = jnp.mean(jnp.square(x - mu), axis=-1, keepdims=True)
    y = (x - mu) * jax.lax.rsqrt(var + eps)
    o_ref[...] = (y * g_ref[...].astype(jnp.float32)
                  + b_ref[...].astype(jnp.float32)).astype(o_ref.dtype)


def _l2norm_kernel(x_ref, o_ref, *, eps):
    x = x_ref[...].astype(jnp.float32)
    n = jnp.sqrt(jnp.sum(x * x, axis=-1, keepdims=True))
    o_ref[...] = (x / jnp.maximum(n, eps)).astype(o_ref.dtype)


# ----------------------------- kernel wrappers ------------------------------


def matmul(x, w, b=None, activation=None, residual=None, out_dtype=jnp.bfloat16):
    """(M,K)@(K,N) + b (+GELU) (+residual), tiled with an f32 VMEM accumulator."""
    M, K = x.shape
    N = w.shape[1]
    tm, Mp = _pick_tile(M, _TM, 16)
    tn, Np = _pick_tile(N, _TN, 128)
    tk, Kp = _pick_tile(K, _TK, 128)
    xp = _pad2(x, Mp, Kp)
    wp = _pad2(w, Kp, Np)
    bp = (jnp.zeros((1, Np), jnp.float32) if b is None
          else _pad2(b.reshape(1, N).astype(jnp.float32), 1, Np))
    inputs = [xp, wp, bp]
    in_specs = [
        pl.BlockSpec((tm, tk), lambda i, j, k: (i, k)),
        pl.BlockSpec((tk, tn), lambda i, j, k: (k, j)),
        pl.BlockSpec((1, tn), lambda i, j, k: (0, j)),
    ]
    has_residual = residual is not None
    if has_residual:
        inputs.append(_pad2(residual, Mp, Np))
        in_specs.append(pl.BlockSpec((tm, tn), lambda i, j, k: (i, j)))
    out = pl.pallas_call(
        functools.partial(_matmul_kernel, activation=activation,
                          has_residual=has_residual),
        out_shape=jax.ShapeDtypeStruct((Mp, Np), out_dtype),
        grid=(Mp // tm, Np // tn, Kp // tk),
        in_specs=in_specs,
        out_specs=pl.BlockSpec((tm, tn), lambda i, j, k: (i, j)),
        scratch_shapes=[pltpu.VMEM((tm, tn), jnp.float32)],
        compiler_params=pltpu.CompilerParams(
            dimension_semantics=("parallel", "parallel", "arbitrary")),
    )(*inputs)
    if Mp != M or Np != N:
        out = out[:M, :N]
    return out


def ln_matmul(x, g, bln, w, b=None, activation=None, eps=1e-5,
              out_dtype=jnp.bfloat16):
    """Fused LayerNorm(x) @ w + b (+GELU). K is kept whole (needed for LN stats);
    the x tile stays resident across the N grid axis and LN is computed once per
    row tile into a bf16 VMEM scratch."""
    M, K = x.shape
    N = w.shape[1]
    tm, Mp = _pick_tile(M, _TM, 16)
    tn, Np = _pick_tile(N, _TN, 128)
    xp = _pad2(x, Mp, K)
    wp = _pad2(w, K, Np)
    bp = (jnp.zeros((1, Np), jnp.float32) if b is None
          else _pad2(b.reshape(1, N).astype(jnp.float32), 1, Np))
    out = pl.pallas_call(
        functools.partial(_ln_matmul_kernel, eps=eps, activation=activation),
        out_shape=jax.ShapeDtypeStruct((Mp, Np), out_dtype),
        grid=(Mp // tm, Np // tn),
        in_specs=[
            pl.BlockSpec((tm, K), lambda i, j: (i, 0)),
            pl.BlockSpec((1, K), lambda i, j: (0, 0)),
            pl.BlockSpec((1, K), lambda i, j: (0, 0)),
            pl.BlockSpec((K, tn), lambda i, j: (0, j)),
            pl.BlockSpec((1, tn), lambda i, j: (0, j)),
        ],
        out_specs=pl.BlockSpec((tm, tn), lambda i, j: (i, j)),
        scratch_shapes=[pltpu.VMEM((tm, K), jnp.bfloat16)],
        # j must stay sequential per row-tile so the LN scratch (written at j==0)
        # is valid for all later j of the same i.
        compiler_params=pltpu.CompilerParams(
            dimension_semantics=("parallel", "arbitrary")),
    )(xp, g.reshape(1, K), bln.reshape(1, K), wp, bp)
    if Mp != M or Np != N:
        out = out[:M, :N]
    return out


def attention(qkv_h, heads, scale, causal):
    """qkv_h: (B, 3*heads, S, Dh) head-major bf16 slab (q heads, then k heads,
    then v heads). Returns (B, heads, S, Dh) bf16."""
    B, H3, S, Dh = qkv_h.shape
    assert H3 == 3 * heads

    def spec(which):
        return pl.BlockSpec((1, 1, S, Dh),
                            lambda b, h, w=which: (b, w * heads + h, 0, 0))

    return pl.pallas_call(
        functools.partial(_attn_kernel, scale=scale, causal=causal),
        out_shape=jax.ShapeDtypeStruct((B, heads, S, Dh), jnp.bfloat16),
        grid=(B, heads),
        in_specs=[spec(0), spec(1), spec(2)],
        out_specs=pl.BlockSpec((1, 1, S, Dh), lambda b, h: (b, h, 0, 0)),
        compiler_params=pltpu.CompilerParams(
            dimension_semantics=("parallel", "parallel")),
    )(qkv_h, qkv_h, qkv_h)


def layernorm(x, g, b, eps=1e-5):
    M, D = x.shape
    tm, Mp = _pick_tile(M, _TM, 16)
    xp = _pad2(x, Mp, D)
    out = pl.pallas_call(
        functools.partial(_layernorm_kernel, eps=eps),
        out_shape=jax.ShapeDtypeStruct((Mp, D), x.dtype),
        grid=(Mp // tm,),
        in_specs=[pl.BlockSpec((tm, D), lambda i: (i, 0)),
                  pl.BlockSpec((1, D), lambda i: (0, 0)),
                  pl.BlockSpec((1, D), lambda i: (0, 0))],
        out_specs=pl.BlockSpec((tm, D), lambda i: (i, 0)),
        compiler_params=pltpu.CompilerParams(dimension_semantics=("parallel",)),
    )(xp, g.reshape(1, D), b.reshape(1, D))
    return out[:M] if Mp != M else out


def l2_normalize(x, eps=1e-12):
    M, D = x.shape
    tm, Mp = _pick_tile(M, _TM, 16)
    xp = _pad2(x, Mp, D)
    out = pl.pallas_call(
        functools.partial(_l2norm_kernel, eps=eps),
        out_shape=jax.ShapeDtypeStruct((Mp, D), x.dtype),
        grid=(Mp // tm,),
        in_specs=[pl.BlockSpec((tm, D), lambda i: (i, 0))],
        out_specs=pl.BlockSpec((tm, D), lambda i: (i, 0)),
        compiler_params=pltpu.CompilerParams(dimension_semantics=("parallel",)),
    )(xp)
    return out[:M] if Mp != M else out


# --------------------------- transformer building ---------------------------


def residual_attention_block(x, p, heads, causal):
    """PyTorch ResidualAttentionBlock: x = x + attn(ln_1(x)); x = x + mlp(ln_2(x))
       (LayerScale = identity). LN and residual adds are fused into the GEMMs;
       the residual stream stays bf16."""
    B, S, D = x.shape
    Dh = D // heads
    x2d = x.reshape(B * S, D)

    qkv = ln_matmul(x2d, p["ln1_g"], p["ln1_b"], p["in_w"], p["in_b"])   # (B*S, 3D) bf16
    # head-major layout: free reshape + one bf16 XLA transpose (layout plumbing)
    qkv_h = qkv.reshape(B, S, 3 * heads, Dh).transpose(0, 2, 1, 3)       # (B, 3H, S, Dh)
    o = attention(qkv_h, heads, 1.0 / float(np.sqrt(Dh)), causal)        # (B, H, S, Dh)
    o2d = o.transpose(0, 2, 1, 3).reshape(B * S, D)
    x2d = matmul(o2d, p["out_w"], p["out_b"], residual=x2d)

    h = ln_matmul(x2d, p["ln2_g"], p["ln2_b"], p["fc_w"], p["fc_b"], activation="gelu")
    x2d = matmul(h, p["proj_w"], p["proj_b"], residual=x2d)
    return x2d.reshape(B, S, D)


def encode_image(image, vp, cfg):
    """VisionTransformer: conv patchify -> +cls -> +pos -> ln_pre -> blocks
       -> ln_post(cls) -> @ proj  (ln_post fused into the projection GEMM)."""
    B, C, H, W = image.shape
    patch = cfg["patch_size"]
    gh, gw = H // patch, W // patch
    n_patch = gh * gw
    width = cfg["width"]

    # im2col patch flattening (C, ph, pw) order == Conv2d weight.reshape(width,-1).T
    patches = image.reshape(B, C, gh, patch, gw, patch).transpose(0, 2, 4, 1, 3, 5)
    patches = patches.reshape(B * n_patch, C * patch * patch).astype(jnp.bfloat16)
    x = matmul(patches, vp["conv_w"])                             # conv1 (no bias), bf16
    x = x.reshape(B, n_patch, width)

    cls = jnp.broadcast_to(vp["class_emb"].reshape(1, 1, width).astype(jnp.bfloat16),
                           (B, 1, width))
    x = jnp.concatenate([cls, x], axis=1)                         # (B, 1+np, width)
    x = x + vp["pos_emb"][None].astype(jnp.bfloat16)
    S = 1 + n_patch
    x = layernorm(x.reshape(B * S, width), vp["ln_pre_g"], vp["ln_pre_b"])
    x = x.reshape(B, S, width)

    for blk in vp["blocks"]:
        x = residual_attention_block(x, blk, cfg["heads"], causal=False)

    pooled = x[:, 0, :]                                           # cls token
    return ln_matmul(pooled, vp["ln_post_g"], vp["ln_post_b"], vp["proj"], None,
                     out_dtype=jnp.float32)


def encode_text(text_tokens, tp, cfg):
    """token_embedding + pos -> causal transformer -> ln_final -> eot -> @ proj.
       LayerNorm is row-wise, so ln_final commutes with the eot row gather; it is
       applied to the gathered rows and fused into the text projection GEMM."""
    B, L = text_tokens.shape
    width = cfg["width"]
    x = jnp.take(tp["tok_emb"], text_tokens, axis=0)              # (B, L, width) glue gather
    x = (x + tp["pos_emb"][None]).astype(jnp.bfloat16)
    for blk in tp["blocks"]:
        x = residual_attention_block(x, blk, cfg["heads"], causal=True)
    eot = jnp.argmax(text_tokens, axis=-1)
    pooled = x[jnp.arange(B), eot]                                # (B, width)
    return ln_matmul(pooled, tp["ln_final_g"], tp["ln_final_b"], tp["text_proj"], None,
                     out_dtype=jnp.float32)


def clip_forward(image, text_tokens, params, vcfg, tcfg, distill=False):
    normalize = not distill
    img = encode_image(image, params["visual"], vcfg)
    txt = encode_text(text_tokens, params["text"], tcfg)
    if normalize:
        img = l2_normalize(img)
        txt = l2_normalize(txt)
    return img, txt, jnp.exp(params["logit_scale"])


# ------------------------------- param init --------------------------------


def _init_block(key, D, mlp_ratio):
    ks = jax.random.split(key, 4)
    hidden = int(D * mlp_ratio)
    s = 0.02
    f32, bf16 = jnp.float32, jnp.bfloat16
    return dict(
        ln1_g=jnp.ones((D,), f32), ln1_b=jnp.zeros((D,), f32),
        in_w=(jax.random.normal(ks[0], (D, 3 * D), f32) * s).astype(bf16),
        in_b=jnp.zeros((3 * D,), f32),
        out_w=(jax.random.normal(ks[1], (D, D), f32) * s).astype(bf16),
        out_b=jnp.zeros((D,), f32),
        ln2_g=jnp.ones((D,), f32), ln2_b=jnp.zeros((D,), f32),
        fc_w=(jax.random.normal(ks[2], (D, hidden), f32) * s).astype(bf16),
        fc_b=jnp.zeros((hidden,), f32),
        proj_w=(jax.random.normal(ks[3], (hidden, D), f32) * s).astype(bf16),
        proj_b=jnp.zeros((D,), f32),
    )


def init_clip_params(key, embed_dim, vcfg, tcfg):
    f32, bf16 = jnp.float32, jnp.bfloat16
    kv, kt = jax.random.split(key)

    # vision tower (matmul weights stored bf16 for the MXU; norms/bias/embeds f32)
    patch, width = vcfg["patch_size"], vcfg["width"]
    n_patch = (vcfg["image_size"] // patch) ** 2
    kvs = jax.random.split(kv, 4 + vcfg["layers"])
    visual = dict(
        conv_w=(jax.random.normal(kvs[0], (3 * patch * patch, width), f32) * 0.02).astype(bf16),
        class_emb=jax.random.normal(kvs[1], (width,), f32) * 0.02,
        pos_emb=jax.random.normal(kvs[2], (1 + n_patch, width), f32) * 0.02,
        ln_pre_g=jnp.ones((width,), f32), ln_pre_b=jnp.zeros((width,), f32),
        ln_post_g=jnp.ones((width,), f32), ln_post_b=jnp.zeros((width,), f32),
        proj=(jax.random.normal(kvs[3], (width, embed_dim), f32) * 0.02).astype(bf16),
        blocks=[_init_block(kvs[4 + i], width, vcfg["mlp_ratio"]) for i in range(vcfg["layers"])],
    )

    # text tower (causal mask is generated in-kernel; no mask buffer needed)
    twidth = tcfg["width"]
    kts = jax.random.split(kt, 3 + tcfg["layers"])
    text = dict(
        tok_emb=jax.random.normal(kts[0], (tcfg["vocab_size"], twidth), f32) * 0.02,
        pos_emb=jax.random.normal(kts[1], (tcfg["context_length"], twidth), f32) * 0.01,
        ln_final_g=jnp.ones((twidth,), f32), ln_final_b=jnp.zeros((twidth,), f32),
        text_proj=(jax.random.normal(kts[2], (twidth, embed_dim), f32) * 0.02).astype(bf16),
        blocks=[_init_block(kts[3 + i], twidth, tcfg["mlp_ratio"]) for i in range(tcfg["layers"])],
    )

    return dict(visual=visual, text=text,
                logit_scale=jnp.asarray(np.log(1.0 / 0.07), f32))


# ---------------------------------- main ------------------------------------


if __name__ == "__main__":
    embed_dim = 16
    vcfg = dict(image_size=16, patch_size=8, width=32, heads=2, layers=2, mlp_ratio=4.0)
    tcfg = dict(context_length=8, vocab_size=64, width=32, heads=2, layers=2, mlp_ratio=4.0)

    params = init_clip_params(jax.random.PRNGKey(0), embed_dim, vcfg, tcfg)

    k_img, k_txt = jax.random.split(jax.random.PRNGKey(0))
    image = jax.random.normal(k_img, (2, 3, 16, 16), jnp.float32)       # NCHW like PyTorch
    text = jax.random.randint(k_txt, (2, 8), 0, tcfg["vocab_size"], jnp.int32)

    img_f, txt_f, logit_scale = clip_forward(image, text, params, vcfg, tcfg, distill=False)
    jax.block_until_ready((img_f, txt_f, logit_scale))

    assert img_f.shape == (2, embed_dim) and txt_f.shape == (2, embed_dim)
    assert bool(jnp.all(jnp.isfinite(img_f))) and bool(jnp.all(jnp.isfinite(txt_f)))
    # normalized features should have unit norm
    assert bool(jnp.allclose(jnp.linalg.norm(img_f, axis=-1), 1.0, atol=1e-4))
    assert bool(jnp.allclose(jnp.linalg.norm(txt_f, axis=-1), 1.0, atol=1e-4))
    print("KERNEL_OK")
</pallas_src>

<mosaic_0001>
module attributes {stable_mosaic.version = 11 : i64} {
  func.func @_matmul_kernel(%arg0: i32, %arg1: i32, %arg2: i32, %arg3: memref<8x192xbf16, #tpu.memory_space<vmem>>, %arg4: memref<192x32xbf16, #tpu.memory_space<vmem>>, %arg5: memref<1x32xf32, #tpu.memory_space<vmem>>, %arg6: memref<8x32xbf16, #tpu.memory_space<vmem>>, %arg7: memref<8x32xf32, #tpu.memory_space<vmem>>) attributes {dimension_semantics = [#tpu.dimension_semantics<parallel>, #tpu.dimension_semantics<parallel>, #tpu.dimension_semantics<arbitrary>], iteration_bounds = array<i64: 1, 1, 1>, scalar_prefetch = 0 : i64, scratch_operands = 1 : i64, tpu.core_type = #tpu.core_type<tc>, window_params = [{transform_indices = @transform_0, window_bounds = array<i64: 8, 192>}, {transform_indices = @transform_1, window_bounds = array<i64: 192, 32>}, {transform_indices = @transform_2, window_bounds = array<i64: 1, 32>}, {transform_indices = @transform_3, window_bounds = array<i64: 8, 32>}]} {
    %c0_i32 = arith.constant 0 : i32
    %0 = arith.cmpi eq, %arg2, %c0_i32 : i32
    %1 = arith.extui %0 : i1 to i32
    %c0_i32_0 = arith.constant 0 : i32
    %2 = arith.cmpi ne, %1, %c0_i32_0 : i32
    scf.if %2 {
      %cst_10 = arith.constant 0.000000e+00 : f32
      %12 = vector.broadcast %cst_10 : f32 to vector<8x32xf32>
      %c0_11 = arith.constant 0 : index
      %c0_12 = arith.constant 0 : index
      %13 = vector.load %arg7[%c0_11, %c0_12] : memref<8x32xf32, #tpu.memory_space<vmem>>, vector<8x32xf32>
      tpu.vector_store %arg7[%c0_11, %c0_12], %12 {strides = array<i32>} : memref<8x32xf32, #tpu.memory_space<vmem>>, vector<8x32xf32>,
    } else {
    }
    %c0 = arith.constant 0 : index
    %c0_1 = arith.constant 0 : index
    %3 = vector.load %arg7[%c0, %c0_1] : memref<8x32xf32, #tpu.memory_space<vmem>>, vector<8x32xf32>
    %c0_2 = arith.constant 0 : index
    %c0_3 = arith.constant 0 : index
    %4 = vector.load %arg3[%c0_2, %c0_3] : memref<8x192xbf16, #tpu.memory_space<vmem>>, vector<8x192xbf16>
    %c0_4 = arith.constant 0 : index
    %c0_5 = arith.constant 0 : index
    %5 = vector.load %arg4[%c0_4, %c0_5] : memref<192x32xbf16, #tpu.memory_space<vmem>>, vector<192x32xbf16>
    %cst = arith.constant dense<0.000000e+00> : vector<8x32xf32>
    %6 = tpu.matmul %4, %5, %cst {dimension_numbers = #tpu.dot_dimension_numbers<[1], [0], [0], [1], [0, 0, 1, 1], [], []>} : vector<8x192xbf16>, vector<192x32xbf16>, vector<8x32xf32> -> vector<8x32xf32>
    %7 = arith.addf %3, %6 : vector<8x32xf32>
    %c0_6 = arith.constant 0 : index
    %c0_7 = arith.constant 0 : index
    %8 = vector.load %arg7[%c0_6, %c0_7] : memref<8x32xf32, #tpu.memory_space<vmem>>, vector<8x32xf32>
    tpu.vector_store %arg7[%c0_6, %c0_7], %7 {strides = array<i32>} : memref<8x32xf32, #tpu.memory_space<vmem>>, vector<8x32xf32>,
    %c0_i32_8 = arith.constant 0 : i32
    %9 = arith.cmpi eq, %arg2, %c0_i32_8 : i32
    %10 = arith.extui %9 : i1 to i32
    %c0_i32_9 = arith.constant 0 : i32
    %11 = arith.cmpi ne, %10, %c0_i32_9 : i32
    scf.if %11 {
      %c0_10 = arith.constant 0 : index
      %c0_11 = arith.constant 0 : index
      %12 = vector.load %arg7[%c0_10, %c0_11] : memref<8x32xf32, #tpu.memory_space<vmem>>, vector<8x32xf32>
      %c0_12 = arith.constant 0 : index
      %c0_13 = arith.constant 0 : index
      %13 = vector.load %arg5[%c0_12, %c0_13] : memref<1x32xf32, #tpu.memory_space<vmem>>, vector<1x32xf32>
      %14 = vector.broadcast %13 : vector<1x32xf32> to vector<8x32xf32>
      %15 = arith.addf %12, %14 : vector<8x32xf32>
      %16 = arith.truncf %15 : vector<8x32xf32> to vector<8x32xbf16>
      %c0_14 = arith.constant 0 : index
      %c0_15 = arith.constant 0 : index
      %17 = vector.load %arg6[%c0_14, %c0_15] : memref<8x32xbf16, #tpu.memory_space<vmem>>, vector<8x32xbf16>
      tpu.vector_store %arg6[%c0_14, %c0_15], %16 {strides = array<i32>} : memref<8x32xbf16, #tpu.memory_space<vmem>>, vector<8x32xbf16>,
    } else {
    }
    return
  }
  func.func @transform_0(%arg0: i32, %arg1: i32, %arg2: i32) -> (i32, i32) {
    %c0_i32 = arith.constant 0 : i32
    return %arg0, %arg2 : i32, i32
  }
  func.func @transform_1(%arg0: i32, %arg1: i32, %arg2: i32) -> (i32, i32) {
    %c0_i32 = arith.constant 0 : i32
    return %arg2, %arg1 : i32, i32
  }
  func.func @transform_2(%arg0: i32, %arg1: i32, %arg2: i32) -> (i32, i32) {
    %c0_i32 = arith.constant 0 : i32
    %c0_i32_0 = arith.constant 0 : i32
    return %c0_i32, %arg1 : i32, i32
  }
  func.func @transform_3(%arg0: i32, %arg1: i32, %arg2: i32) -> (i32, i32) {
    %c0_i32 = arith.constant 0 : i32
    return %arg0, %arg1 : i32, i32
  }
}

</mosaic_0001>

<bundles_post_ra>
// kernel: tpu_custom_call.1
= control target key start
LH: loop header
LB: loop body
LE: loop exit
PB: predicated region body
PF: predicated region fallthrough
CT: control target
= control target key end

     0   :  { %v259_v1 = vmov 0   ;;  %vm20_vm0 = vcmask 261120   ;;  %v260_v3 = vmov 0.0   ;;  %vm126_vm1 = vcmask 523264   ;;  %s338_s0 = inlined_call_operand.vmem [shape: bf16[8,192], index: 0, kind: input, shape index: {}]   ;;  %s339_s1 = inlined_call_operand.vmem [shape: bf16[192,32], index: 1, kind: input, shape index: {}]   ;;  %s340_s2 = inlined_call_operand.vmem [shape: f32[1,32], index: 2, kind: input, shape index: {}]   ;;  %s341_s3 = inlined_call_operand.hbm [shape: bf16[8,32], index: 3, kind: output, shape index: {}]  }
   0x1   :  { %v221_v0 = vld [vmem:[%s339_s1] sm:$0xff]   ;;  %130 = vmatprep.subr.bf16.mxu0 %v259_v1  ;;  %v222_v2 = vld [vmem:[%s339_s1 + $0x8] sm:$0xff]   ;;  %21 = vst.msk [vmem:[#allocation2] sm:$0xff] %vm20_vm0, %v260_v3  ;;  %v223_v4 = vld [vmem:[%s339_s1 + $0x10] sm:$0xff]  }
   0x2   :  { %131 = vmatpush1.bf16.msra.mxu0 %v221_v0  ;;  %v224_v5 = vld [vmem:[%s339_s1 + $0x18] sm:$0xff]   ;;  %v23_v6 = vld [vmem:[%s338_s0] sm:$0xff] }
   0x3   :  { %132 = vmatprep.subr.bf16.mxu0 %v259_v1 }
   0x6   :  { %133 = vmatpush1.bf16.msra.mxu0 %v222_v2 }
   0x7   :  { %134 = vmatprep.subr.bf16.mxu0 %v259_v1 }
   0xa   :  { %135 = vmatpush1.bf16.msra.mxu0 %v223_v4 }
   0xb   :  { %136 = vmatprep.subr.bf16.mxu0 %v259_v1 }
   0xc   :  { %8 = vsyncpa [#allocation4], 0  ;;  %v203_v7 = vcombine.high %v23_v6, %v23_v6  ;;  %v225_v8 = vld [vmem:[%s339_s1 + $0x20] sm:$0xff]   ;;  %v226_v9 = vld [vmem:[%s339_s1 + $0x28] sm:$0xff]   ;;  %v202_v16 = vcombine.low %v23_v6, %v23_v6  ;;  %s261_s12 = smov [#allocation3]   ;;  %vm186_vm2 = vcmask 257024  }
   0xd   :  { %v227_v10 = vld [vmem:[%s339_s1 + $0x30] sm:$0xff]   ;;  %v228_v11 = vld [vmem:[%s339_s1 + $0x38] sm:$0xff]   ;;  %v229_v12 = vld [vmem:[%s339_s1 + $0x40] sm:$0xff]   ;;  %s194_s13 = sshll.u32 %s261_s12, 4  ;;  %s195_s13 = int_to_ptr.vmem [resolvable:$true] %s194_s13 }
   0xe   :  { %137 = vmatpush1.bf16.msra.mxu0 %v224_v5  ;;  %216 = vmatprep.mubr.msk.bf16.mxu0 %vm126_vm1, %v203_v7  ;;  %v230_v13 = vld [vmem:[%s339_s1 + $0x48] sm:$0xff]   ;;  %v231_v14 = vld [vmem:[%s339_s1 + $0x50] sm:$0xff]   ;;  %v232_v15 = vld [vmem:[%s339_s1 + $0x58] sm:$0xff]   ;;  %s235_s1 = scalar_lea.vmem %s195_s13, 64  ;;  %p240_p1 = scmp.lt.s32.totalorder %s195_s13, %s195_s13 }
   0xf   :  { %138 = vmatprep.subr.bf16.mxu0 %v259_v1  ;;  %v22_v17 = vld [vmem:[#allocation2] sm:$0xff]  ;;  %p236_p0 = scmp.ne.s32.totalorder %s195_s13, %s235_s1  ;;  %p241_p2 = scmp.lt.s32.totalorder %s235_s1, %s235_s1 }
  0x10   :  { %v217_v23 = vld [vmem:[%s340_s2] ss:$0 sm:$0xff] }
  0x11   :  { %p242_p3 = por %p241_p2, %p240_p1 }
  0x12   :  { %139 = vmatpush1.bf16.msra.mxu0 %v225_v8 }
  0x13   :  { %140 = vmatprep.subr.bf16.mxu0 %v259_v1  ;;  %p243_p4 = pnand %p242_p3, %p236_p0 }
  0x16   :  { %141 = vmatpush1.bf16.msra.mxu0 %v226_v9 }
  0x17   :  { %142 = vmatprep.subr.bf16.mxu0 %v259_v1 }
  0x1a   :  { %143 = vmatpush1.bf16.msra.mxu0 %v227_v10 }
  0x1b   :  { %144 = vmatprep.subr.bf16.mxu0 %v259_v1 }
  0x1e   :  { %145 = vmatpush1.bf16.msra.mxu0 %v228_v11 }
  0x1f   :  { %146 = vmatprep.subr.bf16.mxu0 %v259_v1 }
  0x22   :  { %147 = vmatpush1.bf16.msra.mxu0 %v229_v12 }
  0x23   :  { %148 = vmatprep.subr.bf16.mxu0 %v259_v1 }
  0x26   :  { %149 = vmatpush1.bf16.msra.mxu0 %v230_v13 }
  0x27   :  { %150 = vmatprep.subr.bf16.mxu0 %v259_v1 }
  0x2a   :  { %151 = vmatpush1.bf16.msra.mxu0 %v231_v14 }
  0x2b   :  { %152 = vmatprep.subr.bf16.mxu0 %v259_v1 }
  0x2e   :  { %153 = vmatpush1.bf16.msra.mxu0 %v232_v15 }
  0x31   :  { %163 = vmatmul.mubr.bf16.vlgmr.msra.gmra.mrb[0].mxu0 %v202_v16 }
 0x104   :  { %v164_v18 = vpop.f32.mrb[0].mxu0 }
 0x105   :  { %v170_v19 = vadd.f32 %v164_v18, %v22_v17  ;;  %v166_v20 = vpop.f32.mrb[1].mxu0 }
 0x106   :  { %v167_v21 = vpop.f32.mrb[2].mxu0 }
 0x107   :  { %172 = vst.msk [vmem:[#allocation2] sm:$0xff] %vm20_vm0, %v170_v19  ;;  %v168_v22 = vpop.f32.mrb[3].mxu0 }
 0x10e   :  { %v176_v24 = vld [vmem:[#allocation2] sm:$0xff] }
 0x10f   :  { %v184_v25 = vadd.f32 %v217_v23, %v176_v24 }
 0x111   :  { %v185_v26 = vpack.c.bf16 %v184_v25, %v184_v25 }
 0x113   :  { %187 = vst.msk [vmem:[#allocation3] sm:$0xf] %vm186_vm2, %v185_v26 }
 0x114   :  { %246 = shalt.err (!%p243_p4)
}
 0x115   :  { %s247_s16 = scalar_lea.hbm %s341_s3, 64 }
 0x116   :  { %p248_p5 = scmp.ne.s32.totalorder %s341_s3, %s247_s16  ;;  %p251_p6 = scmp.lt.u32.totalorder %s247_s16, %s341_s3 }
 0x118   :  { %p253_p7 = pnand %p251_p6, %p248_p5 }
 0x11a   :  { %256 = shalt.err (!%p253_p7)
}
 0x11b   :  { %197 = dma.vmem_to_hbm [thread:$0]  %s195_s13, 64, %s341_s3, [#allocation4]  }
 0x11c   :  { %257 = dma.done.wait [#allocation4], 64  }
 0x11d   :  { %258 = vsyncadd [#allocation4], 4294967232 }
 0x11e   :  { %201 = vsyncpa [#allocation4], 1 }

</bundles_post_ra>
